<compile_context>
chip_gen: v5e
topology: v5e:2x2
jax: 0.10.0
libtpu: 0.0.40
codegen_flags: <defaults>
</compile_context>

<pallas_src>
import jax
import jax.numpy as jnp
from jax.experimental import pallas as pl
from jax.experimental.pallas import tpu as pltpu


def _round_up(n, m):
    return ((n + m - 1) // m) * m


def ann_mlp_kernel(x_ref, w1_ref, b1_ref, w2_ref, b2_ref, w3_ref, b3_ref, o_ref):
    # Cast activations to the weight dtype so a bf16-weight path keeps feeding the MXU in
    # bf16 (no-op cast in pure f32).  All matmuls accumulate in f32; bias add + ReLU run on
    # the VPU in f32 (safe on v5e, which has no bf16 VPU).
    x = x_ref[...].astype(w1_ref.dtype)
    h1 = jnp.dot(x, w1_ref[...], preferred_element_type=jnp.float32)
    h1 = jnp.maximum(h1 + b1_ref[...], 0.0)
    h2 = jnp.dot(h1.astype(w2_ref.dtype), w2_ref[...], preferred_element_type=jnp.float32)
    h2 = jnp.maximum(h2 + b2_ref[...], 0.0)
    out = jnp.dot(h2.astype(w3_ref.dtype), w3_ref[...], preferred_element_type=jnp.float32)
    o_ref[...] = (out + b3_ref[...]).astype(o_ref.dtype)


def ann_forward(x, w1, b1, w2, b2, w3, b3, *, block_b=4096):
    """Fused forward pass of ANN_Model.

    x:  (B, input_features)
    w1: (input_features, hidden1),  b1: (1, hidden1)
    w2: (hidden1, hidden2),         b2: (1, hidden2)
    w3: (hidden2, out_features),    b3: (1, out_features)

    block_b: max batch tile (rows per grid step).  Large tiles amortize per-step
             overhead; VMEM footprint at these feature widths is tiny even at 8192
             (2 bufs x tb x (f_in + out) x 4B), so the scoped VMEM defaults are ample
             on v5e / v6e / v7x.
    Weights may be f32 or bf16 (pre-cast once at init); biases should stay f32.
    """
    B, f_in = x.shape
    h1 = w1.shape[1]
    h2 = w2.shape[1]
    n_out = w3.shape[1]
    out_dtype = x.dtype

    # Batch tiling without any wrapper-side pad copy of x.  Keep >=2 grid steps (when the
    # batch allows) so the "parallel" batch axis can be split across v7x's two TensorCores;
    # a ragged last block is handled by Pallas (OOB output rows are dropped).
    if B > 8:
        num_steps = max(2, pl.cdiv(B, block_b))
    else:
        num_steps = 1
    tb = _round_up(pl.cdiv(B, num_steps), 8)
    grid = (pl.cdiv(B, tb),)

    # Weights/biases: full-extent blocks with constant index_maps -> loaded once and
    # resident in VMEM across all grid steps.  x / out: tiled along batch so the BlockSpec
    # pipeline double-buffers their HBM traffic under the (tiny) matmuls.
    def resident(a):
        return pl.BlockSpec(a.shape, lambda i: (0,) * a.ndim)

    param_bytes = sum(int(a.size) * jnp.dtype(a.dtype).itemsize
                      for a in (w1, b1, w2, b2, w3, b3))
    cost = pl.CostEstimate(
        flops=2 * B * (f_in * h1 + h1 * h2 + h2 * n_out),
        transcendentals=0,
        bytes_accessed=B * f_in * jnp.dtype(x.dtype).itemsize
        + B * n_out * jnp.dtype(out_dtype).itemsize
        + param_bytes,
    )

    return pl.pallas_call(
        ann_mlp_kernel,
        out_shape=jax.ShapeDtypeStruct((B, n_out), out_dtype),
        grid=grid,
        in_specs=[
            pl.BlockSpec((tb, f_in), lambda i: (i, 0)),   # x: batch-tiled
            resident(w1), resident(b1),
            resident(w2), resident(b2),
            resident(w3), resident(b3),
        ],
        # Narrow output stays narrow (full last dim is legal): a masked store on 2/128
        # lanes is far cheaper than 64x padded writeback + a wrapper slice re-read.
        out_specs=pl.BlockSpec((tb, n_out), lambda i: (i, 0)),
        compiler_params=pltpu.CompilerParams(dimension_semantics=("parallel",)),
        cost_estimate=cost,
    )(x, w1, b1, w2, b2, w3, b3)


def init_params(key, input_features, hidden1, hidden2, out_features, dtype=jnp.float32):
    """nn.Linear-style U(-1/sqrt(fan_in), 1/sqrt(fan_in)) init.

    Pass dtype=jnp.bfloat16 to create weights in bf16 ONCE (serving path); biases stay f32
    since they are added to the f32 MXU accumulator inside the kernel.
    """
    ks = jax.random.split(key, 6)

    def linear(kw, kb, fan_in, fan_out):
        bound = 1.0 / jnp.sqrt(jnp.float32(fan_in))
        w = jax.random.uniform(kw, (fan_in, fan_out), jnp.float32, -bound, bound).astype(dtype)
        b = jax.random.uniform(kb, (1, fan_out), jnp.float32, -bound, bound)
        return w, b

    w1, b1 = linear(ks[0], ks[1], input_features, hidden1)
    w2, b2 = linear(ks[2], ks[3], hidden1, hidden2)
    w3, b3 = linear(ks[4], ks[5], hidden2, out_features)
    return w1, b1, w2, b2, w3, b3


if __name__ == "__main__":
    key = jax.random.PRNGKey(0)
    k_x, k_p = jax.random.split(key)

    # Small shapes consistent with the module: input_features=8, hidden1=32, hidden2=32,
    # out_features=2.  B=32 -> tb=16, a 2-step parallel batch grid (exercises multi-step +
    # the resident-weight path) with no padding anywhere.
    B, input_features, hidden1, hidden2, out_features = 32, 8, 32, 32, 2

    x = jax.random.normal(k_x, (B, input_features), jnp.float32)
    w1, b1, w2, b2, w3, b3 = init_params(k_p, input_features, hidden1, hidden2, out_features)

    out = ann_forward(x, w1, b1, w2, b2, w3, b3)
    jax.block_until_ready(out)

    # Reference check in plain JAX (same semantics as the PyTorch forward).
    ref = jnp.maximum(x @ w1 + b1, 0.0)
    ref = jnp.maximum(ref @ w2 + b2, 0.0)
    ref = ref @ w3 + b3
    assert out.shape == (B, out_features)
    assert jnp.allclose(out, ref, atol=1e-5, rtol=1e-5)

    print("KERNEL_OK")
</pallas_src>

<mosaic_0001>
module attributes {stable_mosaic.version = 11 : i64} {
  func.func @ann_mlp_kernel(%arg0: i32, %arg1: memref<16x8xf32, #tpu.memory_space<vmem>>, %arg2: memref<8x32xf32, #tpu.memory_space<vmem>>, %arg3: memref<1x32xf32, #tpu.memory_space<vmem>>, %arg4: memref<32x32xf32, #tpu.memory_space<vmem>>, %arg5: memref<1x32xf32, #tpu.memory_space<vmem>>, %arg6: memref<32x2xf32, #tpu.memory_space<vmem>>, %arg7: memref<1x2xf32, #tpu.memory_space<vmem>>, %arg8: memref<16x2xf32, #tpu.memory_space<vmem>>) attributes {dimension_semantics = [#tpu.dimension_semantics<parallel>], iteration_bounds = array<i64: 2>, scalar_prefetch = 0 : i64, scratch_operands = 0 : i64, tpu.core_type = #tpu.core_type<tc>, window_params = [{transform_indices = @transform_0, window_bounds = array<i64: 16, 8>}, {pipeline_mode = #tpu.pipeline_mode<synchronous>, transform_indices = @transform_1, window_bounds = array<i64: 8, 32>}, {pipeline_mode = #tpu.pipeline_mode<synchronous>, transform_indices = @transform_2, window_bounds = array<i64: 1, 32>}, {pipeline_mode = #tpu.pipeline_mode<synchronous>, transform_indices = @transform_3, window_bounds = array<i64: 32, 32>}, {pipeline_mode = #tpu.pipeline_mode<synchronous>, transform_indices = @transform_4, window_bounds = array<i64: 1, 32>}, {pipeline_mode = #tpu.pipeline_mode<synchronous>, transform_indices = @transform_5, window_bounds = array<i64: 32, 2>}, {pipeline_mode = #tpu.pipeline_mode<synchronous>, transform_indices = @transform_6, window_bounds = array<i64: 1, 2>}, {transform_indices = @transform_7, window_bounds = array<i64: 16, 2>}]} {
    %c0 = arith.constant 0 : index
    %c0_0 = arith.constant 0 : index
    %0 = vector.load %arg1[%c0, %c0_0] : memref<16x8xf32, #tpu.memory_space<vmem>>, vector<16x8xf32>
    %c0_1 = arith.constant 0 : index
    %c0_2 = arith.constant 0 : index
    %1 = vector.load %arg2[%c0_1, %c0_2] : memref<8x32xf32, #tpu.memory_space<vmem>>, vector<8x32xf32>
    %cst = arith.constant dense<0.000000e+00> : vector<16x32xf32>
    %2 = tpu.matmul %0, %1, %cst {dimension_numbers = #tpu.dot_dimension_numbers<[1], [0], [0], [1], [0, 0, 1, 1], [], []>} : vector<16x8xf32>, vector<8x32xf32>, vector<16x32xf32> -> vector<16x32xf32>
    %c0_3 = arith.constant 0 : index
    %c0_4 = arith.constant 0 : index
    %3 = vector.load %arg3[%c0_3, %c0_4] : memref<1x32xf32, #tpu.memory_space<vmem>>, vector<1x32xf32>
    %4 = vector.broadcast %3 : vector<1x32xf32> to vector<16x32xf32>
    %5 = arith.addf %2, %4 : vector<16x32xf32>
    %cst_5 = arith.constant 0.000000e+00 : f32
    %6 = vector.broadcast %cst_5 : f32 to vector<16x32xf32>
    %7 = arith.maximumf %5, %6 : vector<16x32xf32>
    %c0_6 = arith.constant 0 : index
    %c0_7 = arith.constant 0 : index
    %8 = vector.load %arg4[%c0_6, %c0_7] : memref<32x32xf32, #tpu.memory_space<vmem>>, vector<32x32xf32>
    %cst_8 = arith.constant dense<0.000000e+00> : vector<16x32xf32>
    %9 = tpu.matmul %7, %8, %cst_8 {dimension_numbers = #tpu.dot_dimension_numbers<[1], [0], [0], [1], [0, 0, 1, 1], [], []>} : vector<16x32xf32>, vector<32x32xf32>, vector<16x32xf32> -> vector<16x32xf32>
    %c0_9 = arith.constant 0 : index
    %c0_10 = arith.constant 0 : index
    %10 = vector.load %arg5[%c0_9, %c0_10] : memref<1x32xf32, #tpu.memory_space<vmem>>, vector<1x32xf32>
    %11 = vector.broadcast %10 : vector<1x32xf32> to vector<16x32xf32>
    %12 = arith.addf %9, %11 : vector<16x32xf32>
    %cst_11 = arith.constant 0.000000e+00 : f32
    %13 = vector.broadcast %cst_11 : f32 to vector<16x32xf32>
    %14 = arith.maximumf %12, %13 : vector<16x32xf32>
    %c0_12 = arith.constant 0 : index
    %c0_13 = arith.constant 0 : index
    %15 = vector.load %arg6[%c0_12, %c0_13] : memref<32x2xf32, #tpu.memory_space<vmem>>, vector<32x2xf32>
    %cst_14 = arith.constant dense<0.000000e+00> : vector<16x2xf32>
    %16 = tpu.matmul %14, %15, %cst_14 {dimension_numbers = #tpu.dot_dimension_numbers<[1], [0], [0], [1], [0, 0, 1, 1], [], []>} : vector<16x32xf32>, vector<32x2xf32>, vector<16x2xf32> -> vector<16x2xf32>
    %c0_15 = arith.constant 0 : index
    %c0_16 = arith.constant 0 : index
    %17 = vector.load %arg7[%c0_15, %c0_16] : memref<1x2xf32, #tpu.memory_space<vmem>>, vector<1x2xf32>
    %18 = vector.broadcast %17 : vector<1x2xf32> to vector<16x2xf32>
    %19 = arith.addf %16, %18 : vector<16x2xf32>
    %c0_17 = arith.constant 0 : index
    %c0_18 = arith.constant 0 : index
    %20 = vector.load %arg8[%c0_17, %c0_18] : memref<16x2xf32, #tpu.memory_space<vmem>>, vector<16x2xf32>
    tpu.vector_store %arg8[%c0_17, %c0_18], %19 {strides = array<i32>} : memref<16x2xf32, #tpu.memory_space<vmem>>, vector<16x2xf32>,
    return
  }
  func.func @transform_0(%arg0: i32) -> (i32, i32) {
    %c0_i32 = arith.constant 0 : i32
    %c0_i32_0 = arith.constant 0 : i32
    return %arg0, %c0_i32 : i32, i32
  }
  func.func @transform_1(%arg0: i32) -> (i32, i32) {
    %c0_i32 = arith.constant 0 : i32
    %c0_i32_0 = arith.constant 0 : i32
    %c0_i32_1 = arith.constant 0 : i32
    return %c0_i32, %c0_i32_0 : i32, i32
  }
  func.func @transform_2(%arg0: i32) -> (i32, i32) {
    %c0_i32 = arith.constant 0 : i32
    %c0_i32_0 = arith.constant 0 : i32
    %c0_i32_1 = arith.constant 0 : i32
    return %c0_i32, %c0_i32_0 : i32, i32
  }
  func.func @transform_3(%arg0: i32) -> (i32, i32) {
    %c0_i32 = arith.constant 0 : i32
    %c0_i32_0 = arith.constant 0 : i32
    %c0_i32_1 = arith.constant 0 : i32
    return %c0_i32, %c0_i32_0 : i32, i32
  }
  func.func @transform_4(%arg0: i32) -> (i32, i32) {
    %c0_i32 = arith.constant 0 : i32
    %c0_i32_0 = arith.constant 0 : i32
    %c0_i32_1 = arith.constant 0 : i32
    return %c0_i32, %c0_i32_0 : i32, i32
  }
  func.func @transform_5(%arg0: i32) -> (i32, i32) {
    %c0_i32 = arith.constant 0 : i32
    %c0_i32_0 = arith.constant 0 : i32
    %c0_i32_1 = arith.constant 0 : i32
    return %c0_i32, %c0_i32_0 : i32, i32
  }
  func.func @transform_6(%arg0: i32) -> (i32, i32) {
    %c0_i32 = arith.constant 0 : i32
    %c0_i32_0 = arith.constant 0 : i32
    %c0_i32_1 = arith.constant 0 : i32
    return %c0_i32, %c0_i32_0 : i32, i32
  }
  func.func @transform_7(%arg0: i32) -> (i32, i32) {
    %c0_i32 = arith.constant 0 : i32
    %c0_i32_0 = arith.constant 0 : i32
    return %arg0, %c0_i32 : i32, i32
  }
}

</mosaic_0001>

<bundles_post_ra>
// kernel: tpu_custom_call.1
= control target key start
LH: loop header
LB: loop body
LE: loop exit
PB: predicated region body
PF: predicated region fallthrough
CT: control target
= control target key end

     0   :  { %s537_s24 = smov 0   ;;  %s601_s0 = inlined_call_operand.vmem [shape: f32[32,8], index: 0, kind: input, shape index: {}]   ;;  %s602_s1 = inlined_call_operand.vmem [shape: f32[8,32], index: 1, kind: input, shape index: {}]   ;;  %s603_s2 = inlined_call_operand.vmem [shape: f32[1,32], index: 2, kind: input, shape index: {}]   ;;  %s604_s3 = inlined_call_operand.vmem [shape: f32[32,32], index: 3, kind: input, shape index: {}]   ;;  %s605_s4 = inlined_call_operand.vmem [shape: f32[1,32], index: 4, kind: input, shape index: {}]   ;;  %s606_s5 = inlined_call_operand.vmem [shape: f32[32,2], index: 5, kind: input, shape index: {}]   ;;  %s607_s6 = inlined_call_operand.vmem [shape: f32[1,2], index: 6, kind: input, shape index: {}]   ;;  %s608_s7 = inlined_call_operand.vmem [shape: f32[32,2], index: 7, kind: output, shape index: {}]  }
   0x1 LB: > { %s457_s25 = sadd.s32 4294967295, %s495_s24   ;;  %p461_p0 = scmp.ge.s32.totalorder %s495_s24, 1  ;;  %s495_s24 = sphi %s537_s24, %s17_s24  }
   0x2   : > { %p238_p1 = scmp.lt.s32.totalorder %s495_s24, 3 }
   0x4   : > { %p239_p2 = pnand %p461_p0, %p238_p1 }
   0x5   : > { %s462_s28 = sshll.u32 (!%p239_p2), %s457_s25, 1 }
   0x6   : > { %242 = sbr.rel (%p239_p2) target bundleno = 424 (0x1a8), region = 48  ;;  %p271_p3 = scmp.lt.s32.totalorder (!%p239_p2), %s462_s28, 3 }
   0xb   : > { %v284_v0 = vld [vmem:[%s602_s1] sm:$0xff]  ;;  %v324_v1 = vld [vmem:[%s604_s3 + $0x18] sm:$0xff]  ;;  %s610_s28 = smov (!%p271_p3, %s462_s28), 3  ;;  %vm289_vm0 = vcmask 64512   ;;  %v323_v4 = vld [vmem:[%s604_s3 + $0x10] sm:$0xff]  ;;  %vm329_vm1 = vcmask 261120  }
   0xc   : > { %311 = vmatpush.msra.mxu0 %v284_v0  ;;  %348 = vmatpush.msra.mxu1 %v324_v1  ;;  %s463_s8 = sshll.u32 %s610_s28, 3  ;;  %v322_v5 = vld [vmem:[%s604_s3 + $0x8] sm:$0xff]  ;;  %v321_v6 = vld [vmem:[%s604_s3] sm:$0xff]  ;;  %v364_v7 = vld [vmem:[%s606_s5 + $0x18] sm:$0xff]  ;;  %vm398_vm2 = vcmask 15360  }
   0xd   : > { %474 = vmatpush.msra.mxu3 %v324_v1  ;;  %s274_s11 = scalar_lea.vmem %s601_s0, %s463_s8  ;;  %387 = vmatpush.msra.mxu2 %v364_v7  ;;  %v486_v8 = vld [vmem:[%s603_s2] ss:$0 sm:$0xff]  ;;  %v363_v15 = vld [vmem:[%s606_s5 + $0x10] sm:$0xff]  ;;  %v362_v16 = vld [vmem:[%s606_s5 + $0x8] sm:$0xff]  ;;  %s280_s14 = scalar_lea.vmem %s608_s7, %s463_s8 }
   0xe   : > { %v282_v2 = vld [vmem:[%s274_s11] sm:$0xff]  ;;  %v283_v3 = vld [vmem:[%s274_s11 + $0x8] sm:$0xff]  ;;  %349 = vmatpush.msra.mxu1 %v323_v4 }
   0xf   : > { %466 = vmatmul.msk.f32.vlgmr.msra.gmra.mxu0 %vm289_vm0, %v282_v2  ;;  %475 = vmatpush.msra.mxu3 %v323_v4  ;;  %v361_v17 = vld [vmem:[%s606_s5] sm:$0xff] }
  0x10   : > { %350 = vmatpush.msra.mxu1 %v322_v5  ;;  %388 = vmatpush.msra.mxu2 %v363_v15  ;;  %v487_v18 = vld [vmem:[%s605_s4] ss:$0 sm:$0xff] }
  0x11   : > { %476 = vmatpush.msra.mxu3 %v322_v5  ;;  %v488_v25 = vld [vmem:[%s607_s6] ss:$0 sm:$0xff] }
  0x12   : > { %351 = vmatpush.msra.mxu1 %v321_v6  ;;  %389 = vmatpush.msra.mxu2 %v362_v16 }
  0x13   : > { %477 = vmatpush.msra.mxu3 %v321_v6 }
  0x14   : > { %390 = vmatpush.msra.mxu2 %v361_v17 }
  0x17   : > { %467 = vmatmul.msk.f32.gmra.mxu0 %vm289_vm0, %v283_v3 }
  0x8c   : > { %v313_v9 = vpop.f32.mrf.mxu0 }
  0x8d   : > { %v314_v10 = vadd.f32 %v486_v8, %v313_v9 }
  0x8f   : > { %v319_v11 = vmax.f32 %v314_v10, 0.0 }
  0x91   : > { %468 = vmatmul.msk.f32.vlgmr.msra.gmra.mxu1 %vm329_vm1, %v319_v11 }
  0x94   : > { %v316_v12 = vpop.f32.mrf.mxu0 }
  0x95   : > { %v317_v13 = vadd.f32 %v486_v8, %v316_v12 }
  0x97   : > { %v320_v14 = vmax.f32 %v317_v13, 0.0 }
  0x99   : > { %469 = vmatmul.msk.f32.vlgmr.msra.gmra.mxu3 %vm329_vm1, %v320_v14 }
 0x10e   : > { %v353_v19 = vpop.f32.mrf.mxu1 }
 0x10f   : > { %v354_v20 = vadd.f32 %v487_v18, %v353_v19 }
 0x111   : > { %v359_v21 = vmax.f32 %v354_v20, 0.0 }
 0x113   : > { %470 = vmatmul.msk.f32.vlgmr.msra.gmra.mxu2 %vm329_vm1, %v359_v21 }
 0x11c   : > { %v356_v22 = vpop.f32.mrf.mxu3 }
 0x11d   : > { %v357_v23 = vadd.f32 %v487_v18, %v356_v22 }
 0x11f   : > { %v360_v24 = vmax.f32 %v357_v23, 0.0 }
 0x121   : > { %471 = vmatmul.msk.f32.gmra.mxu2 %vm329_vm1, %v360_v24 }
 0x196   : > { %v392_v26 = vpop.f32.mrf.mxu2 }
 0x197   : > { %v393_v27 = vadd.f32 %v488_v25, %v392_v26 }
 0x199   : > { %399 = vst.msk [vmem:[%s280_s14] sm:$0xff] %vm398_vm2, %v393_v27 }
 0x1a4   : > { %v395_v28 = vpop.f32.mrf.mxu2 }
 0x1a5   : > { %v396_v29 = vadd.f32 %v488_v25, %v395_v28 }
 0x1a7   : > { %400 = vst.msk [vmem:[%s280_s14 + $0x8] sm:$0xff] %vm398_vm2, %v396_v29 }
 0x1a8 PF: > { %s17_s24 = sadd.s32 1, %s495_s24  }
 0x1a9   : > { %p14_p4 = scmp.ge.s32.totalorder %s17_s24, 4  }
 0x1ab   :  { %16 = sbr.rel (!%p14_p4) target bundleno = 1 (0x1), region = 78 }

</bundles_post_ra>
